<compile_context>
chip_gen: v5e
topology: v5e:2x2
jax: 0.10.0
libtpu: 0.0.40
codegen_flags: <defaults>
</compile_context>

<pallas_src>
import jax
import jax.numpy as jnp
import numpy as np
from jax.experimental import pallas as pl
from jax.experimental.pallas import tpu as pltpu

K = 3          # ConvTranspose2d kernel_size when stride == 1
PAD = 1        # ConvTranspose2d padding; equivalent-conv padding = K - 1 - PAD = 1
BN_EPS = 1e-5  # nn.BatchNorm2d default eps
LANES = 128    # TPU lane width


def _round_up(x, m):
    return (x + m - 1) // m * m


def _vmem_budget_bytes():
    # Generation-aware VMEM budget: ~3/4 of physical, capped at 100 MiB
    # (v5e/v6e: 128 MiB physical -> ~96 MiB budget; v7x: 64 MiB -> 48 MiB).
    try:
        phys = int(pltpu.get_tpu_info().vmem_capacity_bytes)
    except Exception:
        phys = 64 * (1 << 20)          # conservative fallback: assume v7x
    return min(phys * 3 // 4, 100 * (1 << 20))


def _choose_block_rows(m_rows, kc_p, vmem_budget):
    # Per grid step (double-buffered): bf16 patch tile + f32 lane-padded output tile.
    per_row = 2 * (kc_p * 2) + 2 * (LANES * 4)
    resident = 2 * kc_p * LANES * 2 + (1 << 20)      # weight block + slack
    tm = (vmem_budget - resident) // per_row
    tm = int(max(16, min(tm, 4096, _round_up(m_rows, 16))))
    return tm - tm % 16


def _conv_stats_kernel(p_ref, w_ref, sum_ref, sq_ref):
    """Phase 1: conv matmul for one row tile; accumulate per-channel sum / sum^2."""
    @pl.when(pl.program_id(0) == 0)
    def _():
        sum_ref[...] = jnp.zeros_like(sum_ref)
        sq_ref[...] = jnp.zeros_like(sq_ref)

    y = jnp.dot(p_ref[...], w_ref[...], preferred_element_type=jnp.float32)
    sum_ref[...] += jnp.sum(y, axis=0, keepdims=True)
    sq_ref[...] += jnp.sum(y * y, axis=0, keepdims=True)


def _conv_scaleshift_relu_kernel(p_ref, w_ref, scale_ref, shift_ref, o_ref):
    """Phase 2: conv matmul for one row tile; fused BatchNorm (scale/shift) + ReLU."""
    y = jnp.dot(p_ref[...], w_ref[...], preferred_element_type=jnp.float32)
    o_ref[...] = jnp.maximum(y * scale_ref[...] + shift_ref[...], 0.0).astype(o_ref.dtype)


def deconv_layer_forward_nhwc(x_nhwc, w_t, gamma, beta, bias=None, block_rows=None):
    """ConvTranspose2d(k=3, s=1, p=1) + BatchNorm2d(train) + ReLU; NHWC in/out.

    x_nhwc: (N, H, W, Cin) f32.  w_t: PyTorch ConvTranspose2d weight (Cin, Cout, K, K).
    `bias` is accepted for interface parity but unused: BatchNorm subtracts the
    per-channel batch mean, which cancels the conv bias exactly.
    """
    del bias
    N, H, W, Cin = x_nhwc.shape
    Cout = w_t.shape[1]
    kc = K * K * Cin
    # Contraction (K*K*Cin) is only rounded to the sublane multiple, NOT to 128:
    # this layer is HBM-bound, and padding the HBM-resident patches ~3.6x just
    # to fill the MXU would trade idle (free) MXU cycles for ~3.6x DMA traffic.
    kc_p = _round_up(kc, 8)
    cout_p = LANES                      # lane-dense output: pad Cout -> 128

    # --- glue: im2col patches with channels on the lane axis (bf16 for the MXU).
    # TODO(synk): replace the materialized im2col (9x input duplication in HBM)
    # with an in-kernel K*K-tap accumulation over a halo-tiled NHWC block.
    p_sp = K - 1 - PAD
    x_pad = jnp.pad(x_nhwc, ((0, 0), (p_sp, p_sp), (p_sp, p_sp), (0, 0)))
    patches = jnp.stack(
        [x_pad[:, kh:kh + H, kw:kw + W, :] for kh in range(K) for kw in range(K)],
        axis=3,                                       # (N, H, W, K*K, Cin)
    ).reshape(N * H * W, kc)

    M = N * H * W
    vmem_budget = _vmem_budget_bytes()
    tm = block_rows if block_rows is not None else _choose_block_rows(M, kc_p, vmem_budget)
    m_p = _round_up(max(M, tm), tm)
    grid = (m_p // tm,)

    # Padded rows are all-zero -> zero conv output rows -> contribute 0 to the
    # sum/sum-sq accumulators (no bias is added), so stats over the true M stay exact.
    patches = jnp.pad(patches, ((0, m_p - M), (0, kc_p - kc))).astype(jnp.bfloat16)

    # conv_transpose weight -> equivalent-conv matmul weight, (kh, kw, ci) x co,
    # zero-padded to (kc_p, 128); bf16 operands, f32 MXU accumulation.
    w_mat = jnp.flip(w_t, axis=(2, 3)).transpose(2, 3, 0, 1).reshape(kc, Cout)
    w_mat = jnp.pad(w_mat, ((0, kc_p - kc), (0, cout_p - Cout))).astype(jnp.bfloat16)

    row_spec = pl.BlockSpec((tm, kc_p), lambda i: (i, 0))
    w_spec = pl.BlockSpec((kc_p, cout_p), lambda i: (0, 0))     # VMEM-resident
    vec_spec = pl.BlockSpec((1, cout_p), lambda i: (0, 0))

    # --- phase 1: per-channel sum / sum-of-squares of the conv output.
    ch_sum, ch_sq = pl.pallas_call(
        _conv_stats_kernel,
        out_shape=(jax.ShapeDtypeStruct((1, cout_p), jnp.float32),
                   jax.ShapeDtypeStruct((1, cout_p), jnp.float32)),
        grid=grid,
        in_specs=[row_spec, w_spec],
        out_specs=(vec_spec, vec_spec),
        compiler_params=pltpu.CompilerParams(
            dimension_semantics=("arbitrary",),       # grid-resident accumulators
            vmem_limit_bytes=vmem_budget),
    )(patches, w_mat)

    # --- fold BatchNorm into a single scale/shift FMA (tiny, plain XLA).
    mean = ch_sum / M
    var = jnp.maximum(ch_sq / M - mean * mean, 0.0)   # guard E[y^2]-E[y]^2 cancellation
    gamma_p = jnp.zeros((1, cout_p), jnp.float32).at[0, :Cout].set(gamma)
    beta_p = jnp.zeros((1, cout_p), jnp.float32).at[0, :Cout].set(beta)
    scale = gamma_p * jax.lax.rsqrt(var + BN_EPS)
    shift = beta_p - mean * scale

    # --- phase 2: recompute the conv tile, apply fused BN + ReLU (lane-dense store).
    out_flat = pl.pallas_call(
        _conv_scaleshift_relu_kernel,
        out_shape=jax.ShapeDtypeStruct((m_p, cout_p), jnp.float32),
        grid=grid,
        in_specs=[row_spec, w_spec, vec_spec, vec_spec],
        out_specs=pl.BlockSpec((tm, cout_p), lambda i: (i, 0)),
        compiler_params=pltpu.CompilerParams(
            dimension_semantics=("parallel",),        # shards across v7x TensorCores
            vmem_limit_bytes=vmem_budget),
    )(patches, w_mat, scale, shift)

    return out_flat[:M, :Cout].reshape(N, H, W, Cout)


def deconv_layer_forward(x_nchw, w_t, bias, gamma, beta, block_rows=None):
    """NCHW adapter matching the PyTorch module's layout."""
    # TODO(synk): in a real pipeline keep NHWC end-to-end; these two transposes
    # are layout glue only for parity with the NCHW PyTorch reference.
    x_nhwc = jnp.transpose(x_nchw, (0, 2, 3, 1))
    y = deconv_layer_forward_nhwc(x_nhwc, w_t, gamma, beta, bias=bias,
                                  block_rows=block_rows)
    return jnp.transpose(y, (0, 3, 1, 2))


def _ref_forward(x, w_t, bias, gamma, beta):
    """Pure-JAX reference straight from the conv-transpose definition (scatter-add)."""
    N, Cin, H, W = x.shape
    Cout = w_t.shape[1]
    full = jnp.zeros((N, Cout, H + K - 1, W + K - 1), jnp.float32)
    for kh in range(K):
        for kw in range(K):
            full = full.at[:, :, kh:kh + H, kw:kw + W].add(
                jnp.einsum('nchw,cd->ndhw', x, w_t[:, :, kh, kw]))
    y = full[:, :, PAD:PAD + H, PAD:PAD + W] + bias[None, :, None, None]
    mean = y.mean(axis=(0, 2, 3), keepdims=True)
    var = jnp.square(y - mean).mean(axis=(0, 2, 3), keepdims=True)
    y = (y - mean) / jnp.sqrt(var + BN_EPS)
    y = y * gamma[None, :, None, None] + beta[None, :, None, None]
    return jnp.maximum(y, 0.0)


if __name__ == "__main__":
    N, Cin, Cout, H, W = 2, 4, 8, 16, 16

    key = jax.random.PRNGKey(0)
    kx, kw, kb = jax.random.split(key, 3)

    x = jax.random.normal(kx, (N, Cin, H, W), dtype=jnp.float32)
    fan_in = Cin * K * K
    bound = 1.0 / np.sqrt(fan_in)
    w_t = jax.random.uniform(kw, (Cin, Cout, K, K), jnp.float32, -bound, bound)
    bias = jax.random.uniform(kb, (Cout,), jnp.float32, -bound, bound)
    # BatchNorm2d affine params at their PyTorch init values
    gamma = jnp.ones((Cout,), jnp.float32)
    beta = jnp.zeros((Cout,), jnp.float32)

    # TODO(synk): dropout (drop>0), the gated branch and non-ReLU nl options are
    # not instantiated under the default constructor config and are omitted.

    # block_rows=128 -> a 4-step grid at this toy size, so the tiled pipeline and
    # the cross-step BatchNorm accumulation are actually exercised.
    out = deconv_layer_forward(x, w_t, bias, gamma, beta, block_rows=128)
    out = jax.block_until_ready(out)

    ref = _ref_forward(x, w_t, bias, gamma, beta)
    # bf16 MXU operands (f32 accumulation) vs. the f32 reference.
    np.testing.assert_allclose(np.asarray(out), np.asarray(ref), rtol=2e-2, atol=2e-2)

    print("KERNEL_OK")
</pallas_src>

<mosaic_0001>
module attributes {stable_mosaic.version = 11 : i64} {
  func.func @_conv_stats_kernel(%arg0: i32, %arg1: memref<128x40xbf16, #tpu.memory_space<vmem>>, %arg2: memref<40x128xbf16, #tpu.memory_space<vmem>>, %arg3: memref<1x128xf32, #tpu.memory_space<vmem>>, %arg4: memref<1x128xf32, #tpu.memory_space<vmem>>) attributes {dimension_semantics = [#tpu.dimension_semantics<arbitrary>], iteration_bounds = array<i64: 4>, scalar_prefetch = 0 : i64, scratch_operands = 0 : i64, tpu.core_type = #tpu.core_type<tc>, window_params = [{transform_indices = @transform_0, window_bounds = array<i64: 128, 40>}, {pipeline_mode = #tpu.pipeline_mode<synchronous>, transform_indices = @transform_1, window_bounds = array<i64: 40, 128>}, {pipeline_mode = #tpu.pipeline_mode<synchronous>, transform_indices = @transform_2, window_bounds = array<i64: 1, 128>}, {pipeline_mode = #tpu.pipeline_mode<synchronous>, transform_indices = @transform_3, window_bounds = array<i64: 1, 128>}]} {
    %c0_i32 = arith.constant 0 : i32
    %0 = arith.cmpi eq, %arg0, %c0_i32 : i32
    %1 = arith.extui %0 : i1 to i32
    %c0_i32_0 = arith.constant 0 : i32
    %2 = arith.cmpi ne, %1, %c0_i32_0 : i32
    scf.if %2 {
      %cst_14 = arith.constant 0.000000e+00 : f32
      %17 = vector.broadcast %cst_14 : f32 to vector<1x128xf32>
      %c0_15 = arith.constant 0 : index
      %c0_16 = arith.constant 0 : index
      %18 = vector.load %arg3[%c0_15, %c0_16] : memref<1x128xf32, #tpu.memory_space<vmem>>, vector<1x128xf32>
      tpu.vector_store %arg3[%c0_15, %c0_16], %17 {strides = array<i32>} : memref<1x128xf32, #tpu.memory_space<vmem>>, vector<1x128xf32>,
      %cst_17 = arith.constant 0.000000e+00 : f32
      %19 = vector.broadcast %cst_17 : f32 to vector<1x128xf32>
      %c0_18 = arith.constant 0 : index
      %c0_19 = arith.constant 0 : index
      %20 = vector.load %arg4[%c0_18, %c0_19] : memref<1x128xf32, #tpu.memory_space<vmem>>, vector<1x128xf32>
      tpu.vector_store %arg4[%c0_18, %c0_19], %19 {strides = array<i32>} : memref<1x128xf32, #tpu.memory_space<vmem>>, vector<1x128xf32>,
    } else {
    }
    %c0 = arith.constant 0 : index
    %c0_1 = arith.constant 0 : index
    %3 = vector.load %arg1[%c0, %c0_1] : memref<128x40xbf16, #tpu.memory_space<vmem>>, vector<128x40xbf16>
    %c0_2 = arith.constant 0 : index
    %c0_3 = arith.constant 0 : index
    %4 = vector.load %arg2[%c0_2, %c0_3] : memref<40x128xbf16, #tpu.memory_space<vmem>>, vector<40x128xbf16>
    %cst = arith.constant dense<0.000000e+00> : vector<128x128xf32>
    %5 = tpu.matmul %3, %4, %cst {dimension_numbers = #tpu.dot_dimension_numbers<[1], [0], [0], [1], [0, 0, 1, 1], [], []>} : vector<128x40xbf16>, vector<40x128xbf16>, vector<128x128xf32> -> vector<128x128xf32>
    %c0_4 = arith.constant 0 : index
    %c0_5 = arith.constant 0 : index
    %6 = vector.load %arg3[%c0_4, %c0_5] : memref<1x128xf32, #tpu.memory_space<vmem>>, vector<1x128xf32>
    %cst_6 = arith.constant dense<0.000000e+00> : vector<128xf32>
    %7 = vector.multi_reduction <add>, %5, %cst_6 [0] : vector<128x128xf32> to vector<128xf32>
    %8 = vector.shape_cast %7 : vector<128xf32> to vector<1x128xf32>
    %9 = arith.addf %6, %8 : vector<1x128xf32>
    %c0_7 = arith.constant 0 : index
    %c0_8 = arith.constant 0 : index
    %10 = vector.load %arg3[%c0_7, %c0_8] : memref<1x128xf32, #tpu.memory_space<vmem>>, vector<1x128xf32>
    tpu.vector_store %arg3[%c0_7, %c0_8], %9 {strides = array<i32>} : memref<1x128xf32, #tpu.memory_space<vmem>>, vector<1x128xf32>,
    %c0_9 = arith.constant 0 : index
    %c0_10 = arith.constant 0 : index
    %11 = vector.load %arg4[%c0_9, %c0_10] : memref<1x128xf32, #tpu.memory_space<vmem>>, vector<1x128xf32>
    %12 = arith.mulf %5, %5 : vector<128x128xf32>
    %cst_11 = arith.constant dense<0.000000e+00> : vector<128xf32>
    %13 = vector.multi_reduction <add>, %12, %cst_11 [0] : vector<128x128xf32> to vector<128xf32>
    %14 = vector.shape_cast %13 : vector<128xf32> to vector<1x128xf32>
    %15 = arith.addf %11, %14 : vector<1x128xf32>
    %c0_12 = arith.constant 0 : index
    %c0_13 = arith.constant 0 : index
    %16 = vector.load %arg4[%c0_12, %c0_13] : memref<1x128xf32, #tpu.memory_space<vmem>>, vector<1x128xf32>
    tpu.vector_store %arg4[%c0_12, %c0_13], %15 {strides = array<i32>} : memref<1x128xf32, #tpu.memory_space<vmem>>, vector<1x128xf32>,
    return
  }
  func.func @transform_0(%arg0: i32) -> (i32, i32) {
    %c0_i32 = arith.constant 0 : i32
    %c0_i32_0 = arith.constant 0 : i32
    return %arg0, %c0_i32 : i32, i32
  }
  func.func @transform_1(%arg0: i32) -> (i32, i32) {
    %c0_i32 = arith.constant 0 : i32
    %c0_i32_0 = arith.constant 0 : i32
    %c0_i32_1 = arith.constant 0 : i32
    return %c0_i32, %c0_i32_0 : i32, i32
  }
  func.func @transform_2(%arg0: i32) -> (i32, i32) {
    %c0_i32 = arith.constant 0 : i32
    %c0_i32_0 = arith.constant 0 : i32
    %c0_i32_1 = arith.constant 0 : i32
    return %c0_i32, %c0_i32_0 : i32, i32
  }
  func.func @transform_3(%arg0: i32) -> (i32, i32) {
    %c0_i32 = arith.constant 0 : i32
    %c0_i32_0 = arith.constant 0 : i32
    %c0_i32_1 = arith.constant 0 : i32
    return %c0_i32, %c0_i32_0 : i32, i32
  }
}

</mosaic_0001>

<bundles_post_ra>
// kernel: tpu_custom_call.1
= control target key start
LH: loop header
LB: loop body
LE: loop exit
PB: predicated region body
PF: predicated region fallthrough
CT: control target
= control target key end

     0   :  { %9 = vsyncpa [#allocation3], 0  ;;  %s717_s0 = inlined_call_operand.vmem [shape: bf16[512,40], index: 0, kind: input, shape index: {}]   ;;  %s718_s1 = inlined_call_operand.vmem [shape: bf16[40,128], index: 1, kind: input, shape index: {}]   ;;  %s719_s2 = inlined_call_operand.hbm [shape: f32[1,128], index: 2, kind: output, shape index: {0}]   ;;  %s720_s3 = inlined_call_operand.hbm [shape: f32[1,128], index: 3, kind: output, shape index: {1}]  }
   0x1   :  { %10 = vsyncpa [#allocation5], 0  ;;  %s653_s12 = smov 0  }
   0x2 LB: > { %s659_s13 = sadd.s32 4294967295, %s628_s12   ;;  %p458_p0 = scmp.ge.s32.totalorder %s628_s12, 1  ;;  %s628_s12 = sphi %s653_s12, %s16_s12  }
   0x3   : > { %p133_p1 = scmp.lt.s32.totalorder %s628_s12, 5 }
   0x5   : > { %p134_p2 = pnand %p458_p0, %p133_p1 }
   0x6   : > { %s459_s14 = sshll.u32 (!%p134_p2), %s659_s13, 4  ;;  %p461_p4 = scmp.ne.s32.totalorder (!%p134_p2), %s659_s13, 0 }
   0x7   : > { %137 = sbr.rel (%p134_p2) target bundleno = 235 (0xeb), region = 28  ;;  %p153_p3 = scmp.lt.s32.totalorder (!%p134_p2), %s459_s14, 63 }
   0xc   : > { %s722_s14 = smov (!%p153_p3, %s459_s14), 63  ;;  %162 = sbr.rel (%p461_p4) target bundleno = 20 (0x14), region = 32 }
   0xd   : > { %s460_s15 = sshll.u32 %s722_s14, 2 }
   0xe   : > { %s667_s18 = scalar_lea.vmem %s717_s0, %s460_s15 }
  0x11   : > { %v630_v0 = vmov 0.0  }
  0x12   : > { %163 = vst [vmem:[#allocation2] sm:$0x1] %v630_v0 }
  0x13   : > { %164 = vst [vmem:[#allocation4] sm:$0x1] %v630_v0 }
  0x14 PF: > { %v185_v1 = vld [vmem:[%s718_s1 + $0x10] sm:$0xf]  ;;  %vm266_vm0 = vcmask 1043456   ;;  %v525_v5 = vld [vmem:[%s718_s1 + $0x8] sm:$0xff]  ;;  %v524_v6 = vld [vmem:[%s718_s1] sm:$0xff]  ;;  %vm241_vm1 = vcmask 326656  }
  0x15   : > { %v235_v2 = vunpack.c.l.b16 %v185_v1  ;;  %v516_v7 = vld [vmem:[%s667_s18] sm:$0xff]  ;;  %v518_v8 = vld [vmem:[%s667_s18 + $0x10] sm:$0xff]  ;;  %v517_v11 = vld [vmem:[%s667_s18 + $0x8] sm:$0xff]  ;;  %s631_s25 = smov [#allocation2]   ;;  %s391_s29 = sshll.u32 %s719_s2, 4  ;;  %s392_s29 = int_to_ptr.hbm [resolvable:$true] %s391_s29 }
  0x16   : > { %v520_v9 = vld [vmem:[%s667_s18 + $0x20] sm:$0xff]  ;;  %v522_v10 = vld [vmem:[%s667_s18 + $0x30] sm:$0xff]  ;;  %v519_v12 = vld [vmem:[%s667_s18 + $0x18] sm:$0xff]  ;;  %s389_s26 = sshll.u32 %s631_s25, 4  ;;  %p543_p5 = scmp.eq.s32.totalorder %s659_s13, 3  ;;  %s390_s26 = int_to_ptr.vmem [resolvable:$true] %s389_s26 }
  0x17   : > { %v238_v3 = vpack.c.b16 %v235_v2, %v235_v2  ;;  %v521_v13 = vld [vmem:[%s667_s18 + $0x28] sm:$0xff]  ;;  %v523_v14 = vld [vmem:[%s667_s18 + $0x38] sm:$0xff]  ;;  %s632_s30 = smov [#allocation4]   ;;  %s403_s7 = sshll.u32 %s720_s3, 4  ;;  %s404_s7 = int_to_ptr.hbm [resolvable:$true] %s403_s7 }
  0x18   : > { %s401_s4 = sshll.u32 %s632_s30, 4  ;;  %s402_s4 = int_to_ptr.vmem [resolvable:$true] %s401_s4 }
  0x19   : > { %v268_v4 = vsel %vm266_vm0, %v238_v3, 0 }
  0x1a   : > { %275 = vmatpush.bf16.msra.mxu0 %v268_v4  ;;  %526 = vmatpush.bf16.msra.mxu1 %v268_v4 }
  0x1b   : > { %527 = vmatpush.bf16.msra.mxu2 %v268_v4  ;;  %528 = vmatpush.bf16.msra.mxu3 %v268_v4 }
  0x1e   : > { %276 = vmatpush.bf16.msra.mxu0 %v525_v5  ;;  %529 = vmatpush.bf16.msra.mxu1 %v525_v5 }
  0x1f   : > { %530 = vmatpush.bf16.msra.mxu2 %v525_v5  ;;  %531 = vmatpush.bf16.msra.mxu3 %v525_v5 }
  0x22   : > { %277 = vmatpush.bf16.msra.mxu0 %v524_v6  ;;  %532 = vmatpush.bf16.msra.mxu1 %v524_v6 }
  0x23   : > { %533 = vmatpush.bf16.msra.mxu2 %v524_v6  ;;  %534 = vmatpush.bf16.msra.mxu3 %v524_v6 }
  0x25   : > { %502 = vmatmul.msk.bf16.vlgmr.msra.gmra.mxu0 %vm241_vm1, %v516_v7  ;;  %504 = vmatmul.msk.bf16.vlgmr.msra.gmra.mxu1 %vm241_vm1, %v518_v8 }
  0x26   : > { %506 = vmatmul.msk.bf16.vlgmr.msra.gmra.mxu2 %vm241_vm1, %v520_v9  ;;  %508 = vmatmul.msk.bf16.vlgmr.msra.gmra.mxu3 %vm241_vm1, %v522_v10 }
  0x35   : > { %503 = vmatmul.msk.bf16.gmra.mxu0 %vm241_vm1, %v517_v11  ;;  %505 = vmatmul.msk.bf16.gmra.mxu1 %vm241_vm1, %v519_v12 }
  0x36   : > { %507 = vmatmul.msk.bf16.gmra.mxu2 %vm241_vm1, %v521_v13  ;;  %509 = vmatmul.msk.bf16.gmra.mxu3 %vm241_vm1, %v523_v14 }
  0xa2   : > { %v279_v15 = vpop.f32.mrf.mxu0  ;;  %v289_v16 = vpop.f32.mrf.mxu1 }
  0xa3   : > { %v344_v25 = vmul.f32 %v279_v15, %v279_v15  ;;  %v348_v35 = vmul.f32 %v289_v16, %v289_v16 }
  0xa9   : > { %v299_v18 = vpop.f32.mrf.mxu2  ;;  %v309_v21 = vpop.f32.mrf.mxu3 }
  0xaa   : > { %v281_v17 = vpop.f32.mrf.mxu0  ;;  %v291_v19 = vpop.f32.mrf.mxu1  ;;  %v352_v49 = vmul.f32 %v299_v18, %v299_v18  ;;  %v356_v63 = vmul.f32 %v309_v21, %v309_v21 }
  0xab   : > { %v345_v23 = vmul.f32 %v281_v17, %v281_v17  ;;  %v320_v26 = vadd.f32 %v281_v17, %v279_v15  ;;  %v349_v39 = vmul.f32 %v291_v19, %v291_v19 }
  0xad   : > { %v360_v28 = vadd.f32 %v345_v23, %v344_v25  ;;  %v343_v25 = vld [vmem:[#allocation4] sm:$0x1] }
  0xb1   : > { %v301_v22 = vpop.f32.mrf.mxu2  ;;  %v311_v34 = vpop.f32.mrf.mxu3 }
  0xb2   : > { %v284_v20 = vpop.f32.mrf.mxu0  ;;  %v294_v24 = vpop.f32.mrf.mxu1  ;;  %v353_v53 = vmul.f32 %v301_v22, %v301_v22  ;;  %v357_v2 = vmul.f32 %v311_v34, %v311_v34 }
  0xb3   : > { %v346_v27 = vmul.f32 %v284_v20, %v284_v20  ;;  %v321_v29 = vadd.f32 %v320_v26, %v284_v20  ;;  %v350_v43 = vmul.f32 %v294_v24, %v294_v24 }
  0xb5   : > { %v361_v31 = vadd.f32 %v360_v28, %v346_v27 }
  0xb9   : > { %v304_v38 = vpop.f32.mrf.mxu2  ;;  %v314_v52 = vpop.f32.mrf.mxu3 }
  0xba   : > { %v286_v30 = vpop.f32.mrf.mxu0  ;;  %v296_v42 = vpop.f32.mrf.mxu1  ;;  %v354_v58 = vmul.f32 %v304_v38, %v304_v38  ;;  %v358_v7 = vmul.f32 %v314_v52, %v314_v52 }
  0xbb   : > { %v322_v32 = vadd.f32 %v321_v29, %v286_v30  ;;  %v347_v33 = vmul.f32 %v286_v30, %v286_v30  ;;  %v351_v47 = vmul.f32 %v296_v42, %v296_v42 }
  0xbd   : > { %v323_v36 = vadd.f32 %v322_v32, %v289_v16  ;;  %v362_v37 = vadd.f32 %v361_v31, %v347_v33 }
  0xbf   : > { %v363_v40 = vadd.f32 %v362_v37, %v348_v35  ;;  %v324_v41 = vadd.f32 %v323_v36, %v291_v19 }
  0xc1   : > { %v325_v44 = vadd.f32 %v324_v41, %v294_v24  ;;  %v364_v45 = vadd.f32 %v363_v40, %v349_v39  ;;  %v306_v56 = vpop.f32.mrf.mxu2  ;;  %v316_v5 = vpop.f32.mrf.mxu3 }
  0xc2   : > { %v355_v62 = vmul.f32 %v306_v56, %v306_v56  ;;  %v359_v11 = vmul.f32 %v316_v5, %v316_v5 }
  0xc3   : > { %v326_v46 = vadd.f32 %v325_v44, %v296_v42  ;;  %v365_v48 = vadd.f32 %v364_v45, %v350_v43 }
  0xc5   : > { %v327_v50 = vadd.f32 %v326_v46, %v299_v18  ;;  %v366_v51 = vadd.f32 %v365_v48, %v351_v47 }
  0xc7   : > { %v367_v54 = vadd.f32 %v366_v51, %v352_v49  ;;  %v328_v55 = vadd.f32 %v327_v50, %v301_v22  ;;  %v319_v22 = vld [vmem:[#allocation2] sm:$0x1] }
  0xc9   : > { %v329_v57 = vadd.f32 %v328_v55, %v304_v38  ;;  %v368_v59 = vadd.f32 %v367_v54, %v353_v53 }
  0xcb   : > { %v369_v60 = vadd.f32 %v368_v59, %v354_v58  ;;  %v330_v61 = vadd.f32 %v329_v57, %v306_v56 }
  0xcd   : > { %v331_v0 = vadd.f32 %v330_v61, %v309_v21  ;;  %v370_v1 = vadd.f32 %v369_v60, %v355_v62 }
  0xcf   : > { %v371_v3 = vadd.f32 %v370_v1, %v356_v63  ;;  %v332_v4 = vadd.f32 %v331_v0, %v311_v34 }
  0xd1   : > { %v333_v6 = vadd.f32 %v332_v4, %v314_v52  ;;  %v372_v8 = vadd.f32 %v371_v3, %v357_v2 }
  0xd3   : > { %v373_v9 = vadd.f32 %v372_v8, %v358_v7  ;;  %v334_v10 = vadd.f32 %v333_v6, %v316_v5 }
  0xd5   : > { %v335_v12 = vrot.slane %v334_v10, 4  ;;  %v374_v13 = vadd.f32 %v373_v9, %v359_v11 }
  0xd7   : > { %v336_v14 = vadd.f32 %v335_v12, %v334_v10  ;;  %v375_v15 = vrot.slane %v374_v13, 4 }
  0xd9   : > { %v337_v16 = vrot.slane %v336_v14, 2  ;;  %v376_v17 = vadd.f32 %v375_v15, %v374_v13 }
  0xdb   : > { %v338_v18 = vadd.f32 %v337_v16, %v336_v14  ;;  %v377_v19 = vrot.slane %v376_v17, 2 }
  0xdd   : > { %v339_v20 = vrot.slane %v338_v18, 1  ;;  %v378_v21 = vadd.f32 %v377_v19, %v376_v17 }
  0xdf   : > { %v340_v23 = vadd.f32 %v339_v20, %v338_v18  ;;  %v379_v24 = vrot.slane %v378_v21, 1 }
  0xe1   : > { %v341_v26 = vadd.f32 %v340_v23, %v319_v22  ;;  %v380_v27 = vadd.f32 %v379_v24, %v378_v21 }
  0xe3   : > { %342 = vst [vmem:[#allocation2] sm:$0x1] %v341_v26  ;;  %v381_v28 = vadd.f32 %v380_v27, %v343_v25 }
  0xe4   : > { %536 = dma.vmem_to_hbm [thread:$0]  (%p543_p5), %s390_s26, 16, %s392_s29, [#allocation3]  }
  0xe5   : > { %382 = vst [vmem:[#allocation4] sm:$0x1] %v381_v28 }
  0xe6   : > { %538 = dma.vmem_to_hbm [thread:$0]  (%p543_p5), %s402_s4, 16, %s404_s7, [#allocation5]  }
  0xe7   : > { %619 = dma.done.wait (%p543_p5), [#allocation3], 16  }
  0xe8   : > { %621 = vsyncadd (%p543_p5), [#allocation3], 4294967280 }
  0xe9   : > { %623 = dma.done.wait (%p543_p5), [#allocation5], 16  }
  0xea   : > { %625 = vsyncadd (%p543_p5), [#allocation5], 4294967280 }
  0xeb PF: > { %s16_s12 = sadd.s32 1, %s628_s12  }
  0xec   : > { %p13_p6 = scmp.ge.s32.totalorder %s16_s12, 6  }
  0xee   :  { %15 = sbr.rel (!%p13_p6) target bundleno = 2 (0x2), region = 67 }
  0xf3   :  { %422 = vsyncpa [#allocation3], 1 }
  0xf4   :  { %424 = vsyncpa [#allocation3 + $0x1], 1 }
  0xf5   :  { %425 = vsyncpa [#allocation5], 1 }

</bundles_post_ra>
